<compile_context>
chip_gen: v5e
topology: v5e:2x2
jax: 0.10.0
libtpu: 0.0.40
codegen_flags: <defaults>
</compile_context>

<pallas_src>
import jax
import jax.numpy as jnp
from jax.experimental import pallas as pl
from jax.experimental.pallas import tpu as pltpu


def ensemble_kernel(x1_ref, x2_ref, w_ref, b_ref, o_ref):
    """x1_ref, x2_ref: (B, D) f32 flattened image streams
       w_ref:          (M, D, K) f32 stacked per-model weights
       b_ref:          (M, K) f32 stacked per-model biases
       o_ref:          (B, K) f32 ensemble output."""
    n_models = w_ref.shape[0]

    # Stream fusion: (x1 + x2), in f32 (v5e VPU has no native bf16 adds).
    x = x1_ref[...] + x2_ref[...]                         # (B, D) f32

    # Weight fold: sum_m W_m, statically unrolled f32 adds (M is tiny).
    w_sum = w_ref[0]
    for m in range(1, n_models):
        w_sum = w_sum + w_ref[m]                          # (D, K) f32

    # Bias fold: mean_m b_m.
    b_mean = jnp.sum(b_ref[...], axis=0, keepdims=True) * (1.0 / n_models)  # (1, K)

    # One MXU matmul; cast to bf16 only at the dot, accumulate in f32.
    acc = jnp.dot(x.astype(jnp.bfloat16), w_sum.astype(jnp.bfloat16),
                  preferred_element_type=jnp.float32)     # (B, K) f32

    inv = 1.0 / (2.0 * n_models)
    o_ref[...] = (acc * inv + b_mean).astype(o_ref.dtype)


def ensemble_forward(images1, images2, weights, biases):
    """images{1,2}: (B, C, H, W) f32; weights: (M, D, K) f32; biases: (M, K) f32."""
    B = images1.shape[0]
    M, D, K = weights.shape

    # Flatten only (metadata reshape) — all real preprocessing is in-kernel.
    x1 = images1.reshape(B, D)
    x2 = images2.reshape(B, D)

    return pl.pallas_call(
        ensemble_kernel,
        out_shape=jax.ShapeDtypeStruct((B, K), jnp.float32),
        in_specs=[
            pl.BlockSpec(memory_space=pltpu.MemorySpace.VMEM),  # x1
            pl.BlockSpec(memory_space=pltpu.MemorySpace.VMEM),  # x2
            pl.BlockSpec(memory_space=pltpu.MemorySpace.VMEM),  # stacked weights
            pl.BlockSpec(memory_space=pltpu.MemorySpace.VMEM),  # stacked biases
        ],
        out_specs=pl.BlockSpec(memory_space=pltpu.MemorySpace.VMEM),
    )(x1, x2, weights, biases)


def ensemble_reference(images1, images2, weights, biases):
    """Pure-JAX f32 reference mirroring the PyTorch module exactly."""
    B = images1.shape[0]
    x1 = images1.reshape(B, -1)
    x2 = images2.reshape(B, -1)
    outs1 = jnp.stack([x1 @ weights[m] + biases[m] for m in range(weights.shape[0])])
    outs2 = jnp.stack([x2 @ weights[m] + biases[m] for m in range(weights.shape[0])])
    return (jnp.mean(outs1, axis=0) + jnp.mean(outs2, axis=0)) / 2.0


if __name__ == "__main__":
    # Small, deterministic setup.
    B, C, H, W = 8, 4, 16, 16          # batch, channels, spatial
    M = 3                              # number of models in the ensemble
    D = C * H * W                      # 1024 flattened features
    K = 128                            # output dim (lane-aligned)

    key = jax.random.PRNGKey(0)
    k1, k2, kw, kb = jax.random.split(key, 4)

    images1 = jax.random.normal(k1, (B, C, H, W), dtype=jnp.float32)
    images2 = jax.random.normal(k2, (B, C, H, W), dtype=jnp.float32)
    weights = jax.random.normal(kw, (M, D, K), dtype=jnp.float32) * 0.02
    biases = jax.random.normal(kb, (M, K), dtype=jnp.float32) * 0.1

    out = jax.block_until_ready(ensemble_forward(images1, images2, weights, biases))
    ref = ensemble_reference(images1, images2, weights, biases)

    assert out.shape == (B, K)
    # bf16 matmul operands (f32 accumulation) => slightly loosened tolerance.
    assert jnp.allclose(out, ref, atol=1e-2, rtol=1e-2), "mismatch vs reference"

    print("KERNEL_OK")
</pallas_src>

<mosaic_0001>
module attributes {stable_mosaic.version = 11 : i64} {
  func.func @ensemble_kernel(%arg0: memref<8x1024xf32, #tpu.memory_space<vmem>>, %arg1: memref<8x1024xf32, #tpu.memory_space<vmem>>, %arg2: memref<3x1024x128xf32, #tpu.memory_space<vmem>>, %arg3: memref<3x128xf32, #tpu.memory_space<vmem>>, %arg4: memref<8x128xf32, #tpu.memory_space<vmem>>) attributes {dimension_semantics = [], scalar_prefetch = 0 : i64, scratch_operands = 0 : i64, tpu.core_type = #tpu.core_type<tc>} {
    %c0 = arith.constant 0 : index
    %c0_0 = arith.constant 0 : index
    %0 = vector.load %arg0[%c0, %c0_0] : memref<8x1024xf32, #tpu.memory_space<vmem>>, vector<8x1024xf32>
    %c0_1 = arith.constant 0 : index
    %c0_2 = arith.constant 0 : index
    %1 = vector.load %arg1[%c0_1, %c0_2] : memref<8x1024xf32, #tpu.memory_space<vmem>>, vector<8x1024xf32>
    %2 = arith.addf %0, %1 : vector<8x1024xf32>
    %c0_3 = arith.constant 0 : index
    %c0_4 = arith.constant 0 : index
    %c0_5 = arith.constant 0 : index
    %3 = vector.load %arg2[%c0_3, %c0_4, %c0_5] : memref<3x1024x128xf32, #tpu.memory_space<vmem>>, vector<1x1024x128xf32>
    %4 = vector.shape_cast %3 : vector<1x1024x128xf32> to vector<1024x128xf32>
    %c1 = arith.constant 1 : index
    %c0_6 = arith.constant 0 : index
    %c0_7 = arith.constant 0 : index
    %5 = vector.load %arg2[%c1, %c0_6, %c0_7] : memref<3x1024x128xf32, #tpu.memory_space<vmem>>, vector<1x1024x128xf32>
    %6 = vector.shape_cast %5 : vector<1x1024x128xf32> to vector<1024x128xf32>
    %7 = arith.addf %4, %6 : vector<1024x128xf32>
    %c2 = arith.constant 2 : index
    %c0_8 = arith.constant 0 : index
    %c0_9 = arith.constant 0 : index
    %8 = vector.load %arg2[%c2, %c0_8, %c0_9] : memref<3x1024x128xf32, #tpu.memory_space<vmem>>, vector<1x1024x128xf32>
    %9 = vector.shape_cast %8 : vector<1x1024x128xf32> to vector<1024x128xf32>
    %10 = arith.addf %7, %9 : vector<1024x128xf32>
    %c0_10 = arith.constant 0 : index
    %c0_11 = arith.constant 0 : index
    %11 = vector.load %arg3[%c0_10, %c0_11] : memref<3x128xf32, #tpu.memory_space<vmem>>, vector<3x128xf32>
    %cst = arith.constant dense<0.000000e+00> : vector<128xf32>
    %12 = vector.multi_reduction <add>, %11, %cst [0] : vector<3x128xf32> to vector<128xf32>
    %13 = vector.shape_cast %12 : vector<128xf32> to vector<1x128xf32>
    %cst_12 = arith.constant 0.333333343 : f32
    %14 = vector.broadcast %cst_12 : f32 to vector<1x128xf32>
    %15 = arith.mulf %13, %14 : vector<1x128xf32>
    %16 = arith.truncf %2 : vector<8x1024xf32> to vector<8x1024xbf16>
    %17 = arith.truncf %10 : vector<1024x128xf32> to vector<1024x128xbf16>
    %cst_13 = arith.constant dense<0.000000e+00> : vector<8x128xf32>
    %18 = tpu.matmul %16, %17, %cst_13 {dimension_numbers = #tpu.dot_dimension_numbers<[1], [0], [0], [1], [0, 0, 1, 1], [], []>} : vector<8x1024xbf16>, vector<1024x128xbf16>, vector<8x128xf32> -> vector<8x128xf32>
    %cst_14 = arith.constant 0.166666672 : f32
    %19 = vector.broadcast %cst_14 : f32 to vector<8x128xf32>
    %20 = arith.mulf %18, %19 : vector<8x128xf32>
    %21 = vector.broadcast %15 : vector<1x128xf32> to vector<8x128xf32>
    %22 = arith.addf %20, %21 : vector<8x128xf32>
    %c0_15 = arith.constant 0 : index
    %c0_16 = arith.constant 0 : index
    %23 = vector.load %arg4[%c0_15, %c0_16] : memref<8x128xf32, #tpu.memory_space<vmem>>, vector<8x128xf32>
    tpu.vector_store %arg4[%c0_15, %c0_16], %22 {strides = array<i32>} : memref<8x128xf32, #tpu.memory_space<vmem>>, vector<8x128xf32>,
    return
  }
}

</mosaic_0001>

<bundles_post_ra>
// kernel: tpu_custom_call.1
= control target key start
LH: loop header
LB: loop body
LE: loop exit
PB: predicated region body
PF: predicated region fallthrough
CT: control target
= control target key end

     0   :  { %9 = vsyncpa [#allocation3], 0  ;;  %s1131_s0 = inlined_call_operand.hbm [shape: f32[8,1024], index: 0, kind: input, shape index: {}]   ;;  %s1132_s1 = inlined_call_operand.hbm [shape: f32[8,1024], index: 1, kind: input, shape index: {}]   ;;  %s1133_s2 = inlined_call_operand.hbm [shape: f32[3,1024,128], index: 2, kind: input, shape index: {}]   ;;  %s1134_s3 = inlined_call_operand.hbm [shape: f32[3,128], index: 3, kind: input, shape index: {}]   ;;  %s1135_s4 = inlined_call_operand.hbm [shape: f32[8,128], index: 4, kind: output, shape index: {}]  }
   0x1   :  { %10 = vsyncpa [#allocation6], 0 }
   0x2   :  { %11 = vsyncpa [#allocation9], 0  ;;  %s29_s17 = sshll.u32 %s1132_s1, 4  ;;  %s30_s17 = int_to_ptr.hbm [resolvable:$true] %s29_s17 }
   0x3   :  { %12 = vsyncpa [#allocation4], 0  ;;  %s1084_s18 = smov [#allocation5]   ;;  %s18_s22 = sshll.u32 %s1131_s0, 4  ;;  %s19_s22 = int_to_ptr.hbm [resolvable:$true] %s18_s22 }
   0x4   :  { %s31_s19 = sshll.u32 %s1084_s18, 4  ;;  %s1085_s23 = smov [#allocation2]   ;;  %s32_s19 = int_to_ptr.vmem [resolvable:$true] %s31_s19 }
   0x5   :  { %34 = dma.hbm_to_vmem [thread:$0]  %s30_s17, 1024, %s32_s19, [#allocation6]  }
   0x6   :  { %s20_s24 = sshll.u32 %s1085_s23, 4  ;;  %s39_s27 = sshll.u32 %s1133_s2, 4  ;;  %s21_s24 = int_to_ptr.vmem [resolvable:$true] %s20_s24  ;;  %s40_s27 = int_to_ptr.hbm [resolvable:$true] %s39_s27 }
   0x7   :  { %23 = dma.hbm_to_vmem [thread:$0]  %s19_s22, 1024, %s21_s24, [#allocation3]  }
   0x8   :  { %s1086_s1 = smov [#allocation7]   ;;  %s53_s5 = sshll.u32 %s1134_s3, 4  ;;  %s54_s5 = int_to_ptr.hbm [resolvable:$true] %s53_s5 }
   0x9   :  { %s41_s28 = sshll.u32 %s1086_s1, 4  ;;  %s1087_s6 = smov 128   ;;  %s42_s28 = int_to_ptr.vmem [resolvable:$true] %s41_s28 }
   0xa   :  { %s1088_s0 = smov 8   ;;  %s1089_s7 = smov [#allocation8]  }
   0xb   :  { %47 = dma.hbm_to_vmem [thread:$0]  %s40_s27, 49152, %s42_s28, [#allocation6], %s1087_s6, %s1087_s6, %s1088_s0  }
   0xc   :  { %s55_s8 = sshll.u32 %s1089_s7, 4  ;;  %s56_s8 = int_to_ptr.vmem [resolvable:$true] %s55_s8 }
   0xd   :  { %58 = dma.hbm_to_vmem [thread:$0]  %s54_s5, 64, %s56_s8, [#allocation9]  }
   0xe   :  { %1076 = dma.done.wait [#allocation3], 1024  }
   0xf   :  { %1077 = vsyncadd [#allocation3], 4294966272 }
  0x10   :  { %1078 = dma.done.wait [#allocation6], 50176  }
  0x11   :  { %1079 = vsyncadd [#allocation6], 4294917120 }
  0x12   :  { %1080 = dma.done.wait [#allocation9], 64  }
  0x13   :  { %1081 = vsyncadd [#allocation9], 4294967232  ;;  %v113_v0 = vld [vmem:[#allocation7 + $0x70] sm:$0xff]  ;;  %v114_v1 = vld [vmem:[#allocation7 + $0x78] sm:$0xff]  ;;  %vm742_vm0 = vcmask 1042432   ;;  %s1090_s2 = smov [#allocation10]  }
  0x14   :  { %v242_v2 = vld [vmem:[#allocation7 + $0x470] sm:$0xff]  ;;  %v243_v3 = vld [vmem:[#allocation7 + $0x478] sm:$0xff]  ;;  %v111_v40 = vld [vmem:[#allocation7 + $0x60] sm:$0xff]  ;;  %s935_s3 = sshll.u32 %s1090_s2, 4  ;;  %s937_s11 = sshll.u32 %s1135_s4, 4  ;;  %s936_s3 = int_to_ptr.vmem [resolvable:$true] %s935_s3  ;;  %s938_s11 = int_to_ptr.hbm [resolvable:$true] %s937_s11 }
  0x15   :  { %v370_v4 = vadd.f32 %v242_v2, %v113_v0  ;;  %v499_v5 = vld [vmem:[#allocation7 + $0x870] sm:$0xff]  ;;  %v500_v6 = vld [vmem:[#allocation7 + $0x878] sm:$0xff]  ;;  %v371_v7 = vadd.f32 %v243_v3, %v114_v1  ;;  %v112_v41 = vld [vmem:[#allocation7 + $0x68] sm:$0xff] }
  0x16   :  { %v129_v8 = vld [vmem:[#allocation7 + $0xf0] sm:$0xff]  ;;  %v130_v9 = vld [vmem:[#allocation7 + $0xf8] sm:$0xff]  ;;  %v240_v42 = vld [vmem:[#allocation7 + $0x460] sm:$0xff] }
  0x17   :  { %v258_v10 = vld [vmem:[#allocation7 + $0x4f0] sm:$0xff]  ;;  %v627_v11 = vadd.f32 %v499_v5, %v370_v4  ;;  %v259_v12 = vld [vmem:[#allocation7 + $0x4f8] sm:$0xff]  ;;  %v628_v16 = vadd.f32 %v500_v6, %v371_v7  ;;  %v241_v44 = vld [vmem:[#allocation7 + $0x468] sm:$0xff]  ;;  %v368_v45 = vadd.f32 %v240_v42, %v111_v40 }
  0x18   :  { %v386_v13 = vadd.f32 %v258_v10, %v129_v8  ;;  %v515_v14 = vld [vmem:[#allocation7 + $0x8f0] sm:$0xff]  ;;  %v516_v15 = vld [vmem:[#allocation7 + $0x8f8] sm:$0xff]  ;;  %v387_v17 = vadd.f32 %v259_v12, %v130_v9  ;;  %v497_v46 = vld [vmem:[#allocation7 + $0x860] sm:$0xff]  ;;  %v369_v50 = vadd.f32 %v241_v44, %v112_v41 }
  0x19   :  { %v145_v18 = vld [vmem:[#allocation7 + $0x170] sm:$0xff]  ;;  %v146_v19 = vld [vmem:[#allocation7 + $0x178] sm:$0xff]  ;;  %v766_v26 = vpack.c.bf16 %v628_v16, %v627_v11  ;;  %v498_v47 = vld [vmem:[#allocation7 + $0x868] sm:$0xff]  ;;  %v625_v54 = vadd.f32 %v497_v46, %v368_v45 }
  0x1a   :  { %v274_v20 = vld [vmem:[#allocation7 + $0x570] sm:$0xff]  ;;  %v643_v21 = vadd.f32 %v515_v14, %v386_v13  ;;  %v275_v22 = vld [vmem:[#allocation7 + $0x578] sm:$0xff]  ;;  %v644_v27 = vadd.f32 %v516_v15, %v387_v17  ;;  %v127_v51 = vld [vmem:[#allocation7 + $0xe0] sm:$0xff]  ;;  %v626_v60 = vadd.f32 %v498_v47, %v369_v50 }
  0x1b   :  { %v402_v23 = vadd.f32 %v274_v20, %v145_v18  ;;  %v531_v24 = vld [vmem:[#allocation7 + $0x970] sm:$0xff]  ;;  %v532_v25 = vld [vmem:[#allocation7 + $0x978] sm:$0xff]  ;;  %v403_v28 = vadd.f32 %v275_v22, %v146_v19  ;;  %823 = vmatpush.bf16.msra.mxu0 %v766_v26  ;;  %v128_v52 = vld [vmem:[#allocation7 + $0xe8] sm:$0xff] }
  0x1c   :  { %v161_v29 = vld [vmem:[#allocation7 + $0x1f0] sm:$0xff]  ;;  %v162_v30 = vld [vmem:[#allocation7 + $0x1f8] sm:$0xff]  ;;  %v774_v37 = vpack.c.bf16 %v644_v27, %v643_v21  ;;  %v256_v53 = vld [vmem:[#allocation7 + $0x4e0] sm:$0xff]  ;;  %v765_v6 = vpack.c.bf16 %v626_v60, %v625_v54 }
  0x1d   :  { %v290_v31 = vld [vmem:[#allocation7 + $0x5f0] sm:$0xff]  ;;  %v659_v32 = vadd.f32 %v531_v24, %v402_v23  ;;  %v291_v33 = vld [vmem:[#allocation7 + $0x5f8] sm:$0xff]  ;;  %v660_v38 = vadd.f32 %v532_v25, %v403_v28  ;;  %v257_v55 = vld [vmem:[#allocation7 + $0x4e8] sm:$0xff]  ;;  %v384_v56 = vadd.f32 %v256_v53, %v127_v51 }
  0x1e   :  { %v418_v34 = vadd.f32 %v290_v31, %v161_v29  ;;  %v547_v35 = vld [vmem:[#allocation7 + $0x9f0] sm:$0xff]  ;;  %v548_v36 = vld [vmem:[#allocation7 + $0x9f8] sm:$0xff]  ;;  %v419_v39 = vadd.f32 %v291_v33, %v162_v30  ;;  %836 = vmatpush.bf16.msra.mxu1 %v774_v37  ;;  %v513_v57 = vld [vmem:[#allocation7 + $0x8e0] sm:$0xff]  ;;  %v385_v61 = vadd.f32 %v257_v55, %v128_v52 }
  0x1f   :  { %v782_v48 = vpack.c.bf16 %v660_v38, %v659_v32  ;;  %v514_v58 = vld [vmem:[#allocation7 + $0x8e8] sm:$0xff]  ;;  %v143_v62 = vld [vmem:[#allocation7 + $0x160] sm:$0xff]  ;;  %v641_v1 = vadd.f32 %v513_v57, %v384_v56  ;;  %824 = vmatpush.bf16.msra.mxu0 %v765_v6  ;;  %v109_v20 = vld [vmem:[#allocation7 + $0x50] sm:$0xff] }
  0x20   :  { %v675_v43 = vadd.f32 %v547_v35, %v418_v34  ;;  %v676_v49 = vadd.f32 %v548_v36, %v419_v39  ;;  %v144_v63 = vld [vmem:[#allocation7 + $0x168] sm:$0xff]  ;;  %v272_v0 = vld [vmem:[#allocation7 + $0x560] sm:$0xff]  ;;  %v642_v7 = vadd.f32 %v514_v58, %v385_v61  ;;  %v110_v21 = vld [vmem:[#allocation7 + $0x58] sm:$0xff] }
  0x21   :  { %849 = vmatpush.bf16.msra.mxu2 %v782_v48  ;;  %v273_v2 = vld [vmem:[#allocation7 + $0x568] sm:$0xff]  ;;  %v400_v3 = vadd.f32 %v272_v0, %v143_v62  ;;  %v529_v4 = vld [vmem:[#allocation7 + $0x960] sm:$0xff]  ;;  %v238_v22 = vld [vmem:[#allocation7 + $0x450] sm:$0xff] }
  0x22   :  { %v790_v59 = vpack.c.bf16 %v676_v49, %v675_v43  ;;  %v530_v5 = vld [vmem:[#allocation7 + $0x968] sm:$0xff]  ;;  %v401_v8 = vadd.f32 %v273_v2, %v144_v63  ;;  %v159_v9 = vld [vmem:[#allocation7 + $0x1e0] sm:$0xff]  ;;  %v773_v17 = vpack.c.bf16 %v642_v7, %v641_v1  ;;  %v239_v24 = vld [vmem:[#allocation7 + $0x458] sm:$0xff]  ;;  %v366_v25 = vadd.f32 %v238_v22, %v109_v20 }
  0x23   :  { %v160_v10 = vld [vmem:[#allocation7 + $0x1e8] sm:$0xff]  ;;  %v288_v11 = vld [vmem:[#allocation7 + $0x5e0] sm:$0xff]  ;;  %v657_v12 = vadd.f32 %v529_v4, %v400_v3  ;;  %v495_v26 = vld [vmem:[#allocation7 + $0x850] sm:$0xff]  ;;  %v367_v30 = vadd.f32 %v239_v24, %v110_v21 }
  0x24   :  { %862 = vmatpush.bf16.msra.mxu3 %v790_v59  ;;  %v289_v13 = vld [vmem:[#allocation7 + $0x5e8] sm:$0xff]  ;;  %v416_v14 = vadd.f32 %v288_v11, %v159_v9  ;;  %v545_v15 = vld [vmem:[#allocation7 + $0x9e0] sm:$0xff]  ;;  %v658_v18 = vadd.f32 %v530_v5, %v401_v8  ;;  %v496_v27 = vld [vmem:[#allocation7 + $0x858] sm:$0xff]  ;;  %837 = vmatpush.bf16.msra.mxu1 %v773_v17  ;;  %v623_v34 = vadd.f32 %v495_v26, %v366_v25 }
  0x25   :  { %v546_v16 = vld [vmem:[#allocation7 + $0x9e8] sm:$0xff]  ;;  %v417_v19 = vadd.f32 %v289_v13, %v160_v10  ;;  %v125_v31 = vld [vmem:[#allocation7 + $0xd0] sm:$0xff]  ;;  %v126_v32 = vld [vmem:[#allocation7 + $0xd8] sm:$0xff]  ;;  %v624_v40 = vadd.f32 %v496_v27, %v367_v30 }
  0x26   :  { %v673_v23 = vadd.f32 %v545_v15, %v416_v14  ;;  %v781_v28 = vpack.c.bf16 %v658_v18, %v657_v12  ;;  %v254_v33 = vld [vmem:[#allocation7 + $0x4d0] sm:$0xff]  ;;  %v255_v35 = vld [vmem:[#allocation7 + $0x4d8] sm:$0xff]  ;;  %v107_v0 = vld [vmem:[#allocation7 + $0x40] sm:$0xff] }
  0x27   :  { %v674_v29 = vadd.f32 %v546_v16, %v417_v19  ;;  %v382_v36 = vadd.f32 %v254_v33, %v125_v31  ;;  %v511_v37 = vld [vmem:[#allocation7 + $0x8d0] sm:$0xff]  ;;  %v512_v38 = vld [vmem:[#allocation7 + $0x8d8] sm:$0xff]  ;;  %v383_v41 = vadd.f32 %v255_v35, %v126_v32  ;;  %v764_v50 = vpack.c.bf16 %v624_v40, %v623_v34  ;;  %v108_v1 = vld [vmem:[#allocation7 + $0x48] sm:$0xff] }
  0x28   :  { %850 = vmatpush.bf16.msra.mxu2 %v781_v28  ;;  %v141_v42 = vld [vmem:[#allocation7 + $0x150] sm:$0xff]  ;;  %v142_v43 = vld [vmem:[#allocation7 + $0x158] sm:$0xff]  ;;  %v236_v2 = vld [vmem:[#allocation7 + $0x440] sm:$0xff] }
  0x29   :  { %v789_v39 = vpack.c.bf16 %v674_v29, %v673_v23  ;;  %v270_v44 = vld [vmem:[#allocation7 + $0x550] sm:$0xff]  ;;  %v639_v45 = vadd.f32 %v511_v37, %v382_v36  ;;  %v271_v46 = vld [vmem:[#allocation7 + $0x558] sm:$0xff]  ;;  %v640_v51 = vadd.f32 %v512_v38, %v383_v41  ;;  %825 = vmatpush.bf16.msra.mxu0 %v764_v50  ;;  %v237_v4 = vld [vmem:[#allocation7 + $0x448] sm:$0xff]  ;;  %v364_v5 = vadd.f32 %v236_v2, %v107_v0 }
  0x2a   :  { %v398_v47 = vadd.f32 %v270_v44, %v141_v42  ;;  %v527_v48 = vld [vmem:[#allocation7 + $0x950] sm:$0xff]  ;;  %v528_v49 = vld [vmem:[#allocation7 + $0x958] sm:$0xff]  ;;  %v399_v52 = vadd.f32 %v271_v46, %v142_v43  ;;  %v493_v6 = vld [vmem:[#allocation7 + $0x840] sm:$0xff]  ;;  %v365_v10 = vadd.f32 %v237_v4, %v108_v1 }
  0x2b   :  { %863 = vmatpush.bf16.msra.mxu3 %v789_v39  ;;  %v157_v53 = vld [vmem:[#allocation7 + $0x1d0] sm:$0xff]  ;;  %v158_v54 = vld [vmem:[#allocation7 + $0x1d8] sm:$0xff]  ;;  %v772_v61 = vpack.c.bf16 %v640_v51, %v639_v45  ;;  %v494_v7 = vld [vmem:[#allocation7 + $0x848] sm:$0xff]  ;;  %v621_v14 = vadd.f32 %v493_v6, %v364_v5 }
  0x2c   :  { %v286_v55 = vld [vmem:[#allocation7 + $0x5d0] sm:$0xff]  ;;  %v655_v56 = vadd.f32 %v527_v48, %v398_v47  ;;  %v287_v57 = vld [vmem:[#allocation7 + $0x5d8] sm:$0xff]  ;;  %v656_v62 = vadd.f32 %v528_v49, %v399_v52  ;;  %v123_v11 = vld [vmem:[#allocation7 + $0xc0] sm:$0xff]  ;;  %v622_v20 = vadd.f32 %v494_v7, %v365_v10 }
  0x2d   :  { %v414_v58 = vadd.f32 %v286_v55, %v157_v53  ;;  %v543_v59 = vld [vmem:[#allocation7 + $0x9d0] sm:$0xff]  ;;  %v544_v60 = vld [vmem:[#allocation7 + $0x9d8] sm:$0xff]  ;;  %v415_v63 = vadd.f32 %v287_v57, %v158_v54  ;;  %838 = vmatpush.bf16.msra.mxu1 %v772_v61  ;;  %v124_v12 = vld [vmem:[#allocation7 + $0xc8] sm:$0xff] }
  0x2e   :  { %v780_v8 = vpack.c.bf16 %v656_v62, %v655_v56  ;;  %v252_v13 = vld [vmem:[#allocation7 + $0x4c0] sm:$0xff]  ;;  %v253_v15 = vld [vmem:[#allocation7 + $0x4c8] sm:$0xff]  ;;  %v763_v30 = vpack.c.bf16 %v622_v20, %v621_v14  ;;  %v105_v44 = vld [vmem:[#allocation7 + $0x30] sm:$0xff] }
  0x2f   :  { %v671_v3 = vadd.f32 %v543_v59, %v414_v58  ;;  %v672_v9 = vadd.f32 %v544_v60, %v415_v63  ;;  %v380_v16 = vadd.f32 %v252_v13, %v123_v11  ;;  %v509_v17 = vld [vmem:[#allocation7 + $0x8c0] sm:$0xff]  ;;  %v510_v18 = vld [vmem:[#allocation7 + $0x8c8] sm:$0xff]  ;;  %v381_v21 = vadd.f32 %v253_v15, %v124_v12  ;;  %v106_v45 = vld [vmem:[#allocation7 + $0x38] sm:$0xff] }
  0x30   :  { %851 = vmatpush.bf16.msra.mxu2 %v780_v8  ;;  %v139_v22 = vld [vmem:[#allocation7 + $0x140] sm:$0xff]  ;;  %v140_v23 = vld [vmem:[#allocation7 + $0x148] sm:$0xff]  ;;  %826 = vmatpush.bf16.msra.mxu0 %v763_v30  ;;  %v234_v46 = vld [vmem:[#allocation7 + $0x430] sm:$0xff] }
  0x31   :  { %v788_v19 = vpack.c.bf16 %v672_v9, %v671_v3  ;;  %v268_v24 = vld [vmem:[#allocation7 + $0x540] sm:$0xff]  ;;  %v637_v25 = vadd.f32 %v509_v17, %v380_v16  ;;  %v269_v26 = vld [vmem:[#allocation7 + $0x548] sm:$0xff]  ;;  %v638_v31 = vadd.f32 %v510_v18, %v381_v21  ;;  %v235_v48 = vld [vmem:[#allocation7 + $0x438] sm:$0xff]  ;;  %v362_v49 = vadd.f32 %v234_v46, %v105_v44 }
  0x32   :  { %v396_v27 = vadd.f32 %v268_v24, %v139_v22  ;;  %v525_v28 = vld [vmem:[#allocation7 + $0x940] sm:$0xff]  ;;  %v526_v29 = vld [vmem:[#allocation7 + $0x948] sm:$0xff]  ;;  %v397_v32 = vadd.f32 %v269_v26, %v140_v23  ;;  %v491_v50 = vld [vmem:[#allocation7 + $0x830] sm:$0xff]  ;;  %v363_v54 = vadd.f32 %v235_v48, %v106_v45 }
  0x33   :  { %864 = vmatpush.bf16.msra.mxu3 %v788_v19  ;;  %v155_v33 = vld [vmem:[#allocation7 + $0x1c0] sm:$0xff]  ;;  %v156_v34 = vld [vmem:[#allocation7 + $0x1c8] sm:$0xff]  ;;  %v771_v41 = vpack.c.bf16 %v638_v31, %v637_v25  ;;  %v492_v51 = vld [vmem:[#allocation7 + $0x838] sm:$0xff]  ;;  %v619_v58 = vadd.f32 %v491_v50, %v362_v49 }
  0x34   :  { %v284_v35 = vld [vmem:[#allocation7 + $0x5c0] sm:$0xff]  ;;  %v653_v36 = vadd.f32 %v525_v28, %v396_v27  ;;  %v285_v37 = vld [vmem:[#allocation7 + $0x5c8] sm:$0xff]  ;;  %v654_v42 = vadd.f32 %v526_v29, %v397_v32  ;;  %v121_v55 = vld [vmem:[#allocation7 + $0xb0] sm:$0xff]  ;;  %v620_v0 = vadd.f32 %v492_v51, %v363_v54 }
  0x35   :  { %v412_v38 = vadd.f32 %v284_v35, %v155_v33  ;;  %v541_v39 = vld [vmem:[#allocation7 + $0x9c0] sm:$0xff]  ;;  %v542_v40 = vld [vmem:[#allocation7 + $0x9c8] sm:$0xff]  ;;  %v413_v43 = vadd.f32 %v285_v37, %v156_v34  ;;  %839 = vmatpush.bf16.msra.mxu1 %v771_v41  ;;  %v122_v56 = vld [vmem:[#allocation7 + $0xb8] sm:$0xff] }
  0x36   :  { %v779_v52 = vpack.c.bf16 %v654_v42, %v653_v36  ;;  %v250_v57 = vld [vmem:[#allocation7 + $0x4b0] sm:$0xff]  ;;  %v251_v59 = vld [vmem:[#allocation7 + $0x4b8] sm:$0xff]  ;;  %v762_v10 = vpack.c.bf16 %v620_v0, %v619_v58  ;;  %v103_v24 = vld [vmem:[#allocation7 + $0x20] sm:$0xff] }
  0x37   :  { %v669_v47 = vadd.f32 %v541_v39, %v412_v38  ;;  %v670_v53 = vadd.f32 %v542_v40, %v413_v43  ;;  %v378_v60 = vadd.f32 %v250_v57, %v121_v55  ;;  %v507_v61 = vld [vmem:[#allocation7 + $0x8b0] sm:$0xff]  ;;  %v508_v62 = vld [vmem:[#allocation7 + $0x8b8] sm:$0xff]  ;;  %v379_v1 = vadd.f32 %v251_v59, %v122_v56  ;;  %v104_v25 = vld [vmem:[#allocation7 + $0x28] sm:$0xff] }
  0x38   :  { %852 = vmatpush.bf16.msra.mxu2 %v779_v52  ;;  %v137_v2 = vld [vmem:[#allocation7 + $0x130] sm:$0xff]  ;;  %v138_v3 = vld [vmem:[#allocation7 + $0x138] sm:$0xff]  ;;  %827 = vmatpush.bf16.msra.mxu0 %v762_v10  ;;  %v232_v26 = vld [vmem:[#allocation7 + $0x420] sm:$0xff] }
  0x39   :  { %v787_v63 = vpack.c.bf16 %v670_v53, %v669_v47  ;;  %v266_v4 = vld [vmem:[#allocation7 + $0x530] sm:$0xff]  ;;  %v635_v5 = vadd.f32 %v507_v61, %v378_v60  ;;  %v267_v6 = vld [vmem:[#allocation7 + $0x538] sm:$0xff]  ;;  %v636_v11 = vadd.f32 %v508_v62, %v379_v1  ;;  %v233_v28 = vld [vmem:[#allocation7 + $0x428] sm:$0xff]  ;;  %v360_v29 = vadd.f32 %v232_v26, %v103_v24 }
  0x3a   :  { %v394_v7 = vadd.f32 %v266_v4, %v137_v2  ;;  %v523_v8 = vld [vmem:[#allocation7 + $0x930] sm:$0xff]  ;;  %v524_v9 = vld [vmem:[#allocation7 + $0x938] sm:$0xff]  ;;  %v395_v12 = vadd.f32 %v267_v6, %v138_v3  ;;  %v489_v30 = vld [vmem:[#allocation7 + $0x820] sm:$0xff]  ;;  %v361_v34 = vadd.f32 %v233_v28, %v104_v25 }
  0x3b   :  { %865 = vmatpush.bf16.msra.mxu3 %v787_v63  ;;  %v153_v13 = vld [vmem:[#allocation7 + $0x1b0] sm:$0xff]  ;;  %v154_v14 = vld [vmem:[#allocation7 + $0x1b8] sm:$0xff]  ;;  %v770_v21 = vpack.c.bf16 %v636_v11, %v635_v5  ;;  %v490_v31 = vld [vmem:[#allocation7 + $0x828] sm:$0xff]  ;;  %v617_v38 = vadd.f32 %v489_v30, %v360_v29 }
  0x3c   :  { %v282_v15 = vld [vmem:[#allocation7 + $0x5b0] sm:$0xff]  ;;  %v651_v16 = vadd.f32 %v523_v8, %v394_v7  ;;  %v283_v17 = vld [vmem:[#allocation7 + $0x5b8] sm:$0xff]  ;;  %v652_v22 = vadd.f32 %v524_v9, %v395_v12  ;;  %v119_v35 = vld [vmem:[#allocation7 + $0xa0] sm:$0xff]  ;;  %v618_v44 = vadd.f32 %v490_v31, %v361_v34 }
  0x3d   :  { %v410_v18 = vadd.f32 %v282_v15, %v153_v13  ;;  %v539_v19 = vld [vmem:[#allocation7 + $0x9b0] sm:$0xff]  ;;  %v540_v20 = vld [vmem:[#allocation7 + $0x9b8] sm:$0xff]  ;;  %v411_v23 = vadd.f32 %v283_v17, %v154_v14  ;;  %840 = vmatpush.bf16.msra.mxu1 %v770_v21  ;;  %v120_v36 = vld [vmem:[#allocation7 + $0xa8] sm:$0xff] }
  0x3e   :  { %v778_v32 = vpack.c.bf16 %v652_v22, %v651_v16  ;;  %v248_v37 = vld [vmem:[#allocation7 + $0x4a0] sm:$0xff]  ;;  %v249_v39 = vld [vmem:[#allocation7 + $0x4a8] sm:$0xff]  ;;  %v761_v54 = vpack.c.bf16 %v618_v44, %v617_v38  ;;  %v101_v4 = vld [vmem:[#allocation7 + $0x10] sm:$0xff] }
  0x3f   :  { %v667_v27 = vadd.f32 %v539_v19, %v410_v18  ;;  %v668_v33 = vadd.f32 %v540_v20, %v411_v23  ;;  %v376_v40 = vadd.f32 %v248_v37, %v119_v35  ;;  %v505_v41 = vld [vmem:[#allocation7 + $0x8a0] sm:$0xff]  ;;  %v506_v42 = vld [vmem:[#allocation7 + $0x8a8] sm:$0xff]  ;;  %v377_v45 = vadd.f32 %v249_v39, %v120_v36  ;;  %v102_v5 = vld [vmem:[#allocation7 + $0x18] sm:$0xff] }
  0x40   :  { %853 = vmatpush.bf16.msra.mxu2 %v778_v32  ;;  %v135_v46 = vld [vmem:[#allocation7 + $0x120] sm:$0xff]  ;;  %v136_v47 = vld [vmem:[#allocation7 + $0x128] sm:$0xff]  ;;  %828 = vmatpush.bf16.msra.mxu0 %v761_v54  ;;  %v230_v6 = vld [vmem:[#allocation7 + $0x410] sm:$0xff] }
  0x41   :  { %v786_v43 = vpack.c.bf16 %v668_v33, %v667_v27  ;;  %v264_v48 = vld [vmem:[#allocation7 + $0x520] sm:$0xff]  ;;  %v633_v49 = vadd.f32 %v505_v41, %v376_v40  ;;  %v265_v50 = vld [vmem:[#allocation7 + $0x528] sm:$0xff]  ;;  %v634_v55 = vadd.f32 %v506_v42, %v377_v45  ;;  %v231_v8 = vld [vmem:[#allocation7 + $0x418] sm:$0xff]  ;;  %v358_v9 = vadd.f32 %v230_v6, %v101_v4 }
  0x42   :  { %v392_v51 = vadd.f32 %v264_v48, %v135_v46  ;;  %v521_v52 = vld [vmem:[#allocation7 + $0x920] sm:$0xff]  ;;  %v522_v53 = vld [vmem:[#allocation7 + $0x928] sm:$0xff]  ;;  %v393_v56 = vadd.f32 %v265_v50, %v136_v47  ;;  %v487_v10 = vld [vmem:[#allocation7 + $0x810] sm:$0xff]  ;;  %v359_v14 = vadd.f32 %v231_v8, %v102_v5 }
  0x43   :  { %866 = vmatpush.bf16.msra.mxu3 %v786_v43  ;;  %v151_v57 = vld [vmem:[#allocation7 + $0x1a0] sm:$0xff]  ;;  %v152_v58 = vld [vmem:[#allocation7 + $0x1a8] sm:$0xff]  ;;  %v769_v1 = vpack.c.bf16 %v634_v55, %v633_v49  ;;  %v488_v11 = vld [vmem:[#allocation7 + $0x818] sm:$0xff]  ;;  %v615_v18 = vadd.f32 %v487_v10, %v358_v9 }
  0x44   :  { %v280_v59 = vld [vmem:[#allocation7 + $0x5a0] sm:$0xff]  ;;  %v649_v60 = vadd.f32 %v521_v52, %v392_v51  ;;  %v281_v61 = vld [vmem:[#allocation7 + $0x5a8] sm:$0xff]  ;;  %v650_v2 = vadd.f32 %v522_v53, %v393_v56  ;;  %v117_v15 = vld [vmem:[#allocation7 + $0x90] sm:$0xff]  ;;  %v616_v24 = vadd.f32 %v488_v11, %v359_v14 }
  0x45   :  { %v408_v62 = vadd.f32 %v280_v59, %v151_v57  ;;  %v537_v63 = vld [vmem:[#allocation7 + $0x9a0] sm:$0xff]  ;;  %v538_v0 = vld [vmem:[#allocation7 + $0x9a8] sm:$0xff]  ;;  %v409_v3 = vadd.f32 %v281_v61, %v152_v58  ;;  %841 = vmatpush.bf16.msra.mxu1 %v769_v1  ;;  %v118_v16 = vld [vmem:[#allocation7 + $0x98] sm:$0xff] }
  0x46   :  { %v777_v12 = vpack.c.bf16 %v650_v2, %v649_v60  ;;  %v246_v17 = vld [vmem:[#allocation7 + $0x490] sm:$0xff]  ;;  %v247_v19 = vld [vmem:[#allocation7 + $0x498] sm:$0xff]  ;;  %v760_v34 = vpack.c.bf16 %v616_v24, %v615_v18  ;;  %v99_v48 = vld [vmem:[#allocation7] sm:$0xff] }
  0x47   :  { %v665_v7 = vadd.f32 %v537_v63, %v408_v62  ;;  %v666_v13 = vadd.f32 %v538_v0, %v409_v3  ;;  %v374_v20 = vadd.f32 %v246_v17, %v117_v15  ;;  %v503_v21 = vld [vmem:[#allocation7 + $0x890] sm:$0xff]  ;;  %v504_v22 = vld [vmem:[#allocation7 + $0x898] sm:$0xff]  ;;  %v375_v25 = vadd.f32 %v247_v19, %v118_v16  ;;  %v100_v49 = vld [vmem:[#allocation7 + $0x8] sm:$0xff] }
  0x48   :  { %854 = vmatpush.bf16.msra.mxu2 %v777_v12  ;;  %v133_v26 = vld [vmem:[#allocation7 + $0x110] sm:$0xff]  ;;  %v134_v27 = vld [vmem:[#allocation7 + $0x118] sm:$0xff]  ;;  %829 = vmatpush.bf16.msra.mxu0 %v760_v34  ;;  %v228_v50 = vld [vmem:[#allocation7 + $0x400] sm:$0xff] }
  0x49   :  { %v785_v23 = vpack.c.bf16 %v666_v13, %v665_v7  ;;  %v262_v28 = vld [vmem:[#allocation7 + $0x510] sm:$0xff]  ;;  %v631_v29 = vadd.f32 %v503_v21, %v374_v20  ;;  %v263_v30 = vld [vmem:[#allocation7 + $0x518] sm:$0xff]  ;;  %v632_v35 = vadd.f32 %v504_v22, %v375_v25  ;;  %v229_v52 = vld [vmem:[#allocation7 + $0x408] sm:$0xff]  ;;  %v356_v53 = vadd.f32 %v228_v50, %v99_v48 }
  0x4a   :  { %v390_v31 = vadd.f32 %v262_v28, %v133_v26  ;;  %v519_v32 = vld [vmem:[#allocation7 + $0x910] sm:$0xff]  ;;  %v520_v33 = vld [vmem:[#allocation7 + $0x918] sm:$0xff]  ;;  %v391_v36 = vadd.f32 %v263_v30, %v134_v27  ;;  %v485_v54 = vld [vmem:[#allocation7 + $0x800] sm:$0xff]  ;;  %v357_v58 = vadd.f32 %v229_v52, %v100_v49 }
  0x4b   :  { %867 = vmatpush.bf16.msra.mxu3 %v785_v23  ;;  %v149_v37 = vld [vmem:[#allocation7 + $0x190] sm:$0xff]  ;;  %v150_v38 = vld [vmem:[#allocation7 + $0x198] sm:$0xff]  ;;  %v768_v45 = vpack.c.bf16 %v632_v35, %v631_v29  ;;  %v486_v55 = vld [vmem:[#allocation7 + $0x808] sm:$0xff]  ;;  %v613_v62 = vadd.f32 %v485_v54, %v356_v53 }
  0x4c   :  { %v278_v39 = vld [vmem:[#allocation7 + $0x590] sm:$0xff]  ;;  %v647_v40 = vadd.f32 %v519_v32, %v390_v31  ;;  %v279_v41 = vld [vmem:[#allocation7 + $0x598] sm:$0xff]  ;;  %v648_v46 = vadd.f32 %v520_v33, %v391_v36  ;;  %v115_v59 = vld [vmem:[#allocation7 + $0x80] sm:$0xff]  ;;  %v614_v4 = vadd.f32 %v486_v55, %v357_v58 }
  0x4d   :  { %v406_v42 = vadd.f32 %v278_v39, %v149_v37  ;;  %v535_v43 = vld [vmem:[#allocation7 + $0x990] sm:$0xff]  ;;  %v536_v44 = vld [vmem:[#allocation7 + $0x998] sm:$0xff]  ;;  %v407_v47 = vadd.f32 %v279_v41, %v150_v38  ;;  %842 = vmatpush.bf16.msra.mxu1 %v768_v45  ;;  %v116_v60 = vld [vmem:[#allocation7 + $0x88] sm:$0xff] }
  0x4e   :  { %v776_v56 = vpack.c.bf16 %v648_v46, %v647_v40  ;;  %v244_v61 = vld [vmem:[#allocation7 + $0x480] sm:$0xff]  ;;  %v245_v63 = vld [vmem:[#allocation7 + $0x488] sm:$0xff]  ;;  %v759_v14 = vpack.c.bf16 %v614_v4, %v613_v62  ;;  %v177_v28 = vld [vmem:[#allocation7 + $0x270] sm:$0xff] }
  0x4f   :  { %v663_v51 = vadd.f32 %v535_v43, %v406_v42  ;;  %v664_v57 = vadd.f32 %v536_v44, %v407_v47  ;;  %v372_v0 = vadd.f32 %v244_v61, %v115_v59  ;;  %v501_v1 = vld [vmem:[#allocation7 + $0x880] sm:$0xff]  ;;  %v502_v2 = vld [vmem:[#allocation7 + $0x888] sm:$0xff]  ;;  %v373_v5 = vadd.f32 %v245_v63, %v116_v60  ;;  %v178_v29 = vld [vmem:[#allocation7 + $0x278] sm:$0xff] }
  0x50   :  { %855 = vmatpush.bf16.msra.mxu2 %v776_v56  ;;  %v131_v6 = vld [vmem:[#allocation7 + $0x100] sm:$0xff]  ;;  %v132_v7 = vld [vmem:[#allocation7 + $0x108] sm:$0xff]  ;;  %830 = vmatpush.bf16.msra.mxu0 %v759_v14  ;;  %v306_v30 = vld [vmem:[#allocation7 + $0x670] sm:$0xff] }
  0x51   :  { %v784_v3 = vpack.c.bf16 %v664_v57, %v663_v51  ;;  %v260_v8 = vld [vmem:[#allocation7 + $0x500] sm:$0xff]  ;;  %v629_v9 = vadd.f32 %v501_v1, %v372_v0  ;;  %v261_v10 = vld [vmem:[#allocation7 + $0x508] sm:$0xff]  ;;  %v630_v15 = vadd.f32 %v502_v2, %v373_v5  ;;  %v307_v32 = vld [vmem:[#allocation7 + $0x678] sm:$0xff]  ;;  %v434_v33 = vadd.f32 %v306_v30, %v177_v28 }
  0x52   :  { %v388_v11 = vadd.f32 %v260_v8, %v131_v6  ;;  %v517_v12 = vld [vmem:[#allocation7 + $0x900] sm:$0xff]  ;;  %v518_v13 = vld [vmem:[#allocation7 + $0x908] sm:$0xff]  ;;  %v389_v16 = vadd.f32 %v261_v10, %v132_v7  ;;  %v563_v34 = vld [vmem:[#allocation7 + $0xa70] sm:$0xff]  ;;  %v435_v38 = vadd.f32 %v307_v32, %v178_v29 }
  0x53   :  { %868 = vmatpush.bf16.msra.mxu3 %v784_v3  ;;  %v147_v17 = vld [vmem:[#allocation7 + $0x180] sm:$0xff]  ;;  %v148_v18 = vld [vmem:[#allocation7 + $0x188] sm:$0xff]  ;;  %v767_v25 = vpack.c.bf16 %v630_v15, %v629_v9  ;;  %v564_v35 = vld [vmem:[#allocation7 + $0xa78] sm:$0xff]  ;;  %v691_v42 = vadd.f32 %v563_v34, %v434_v33 }
  0x54   :  { %v276_v19 = vld [vmem:[#allocation7 + $0x580] sm:$0xff]  ;;  %v645_v20 = vadd.f32 %v517_v12, %v388_v11  ;;  %v277_v21 = vld [vmem:[#allocation7 + $0x588] sm:$0xff]  ;;  %v646_v26 = vadd.f32 %v518_v13, %v389_v16  ;;  %v193_v39 = vld [vmem:[#allocation7 + $0x2f0] sm:$0xff]  ;;  %v692_v48 = vadd.f32 %v564_v35, %v435_v38 }
  0x55   :  { %v404_v22 = vadd.f32 %v276_v19, %v147_v17  ;;  %v533_v23 = vld [vmem:[#allocation7 + $0x980] sm:$0xff]  ;;  %v534_v24 = vld [vmem:[#allocation7 + $0x988] sm:$0xff]  ;;  %v405_v27 = vadd.f32 %v277_v21, %v148_v18  ;;  %843 = vmatpush.bf16.msra.mxu1 %v767_v25  ;;  %v194_v40 = vld [vmem:[#allocation7 + $0x2f8] sm:$0xff] }
  0x56   :  { %v775_v36 = vpack.c.bf16 %v646_v26, %v645_v20  ;;  %v322_v41 = vld [vmem:[#allocation7 + $0x6f0] sm:$0xff]  ;;  %v323_v43 = vld [vmem:[#allocation7 + $0x6f8] sm:$0xff]  ;;  %v798_v58 = vpack.c.bf16 %v692_v48, %v691_v42  ;;  %v175_v8 = vld [vmem:[#allocation7 + $0x260] sm:$0xff] }
  0x57   :  { %v661_v31 = vadd.f32 %v533_v23, %v404_v22  ;;  %v662_v37 = vadd.f32 %v534_v24, %v405_v27  ;;  %v450_v44 = vadd.f32 %v322_v41, %v193_v39  ;;  %v579_v45 = vld [vmem:[#allocation7 + $0xaf0] sm:$0xff]  ;;  %v580_v46 = vld [vmem:[#allocation7 + $0xaf8] sm:$0xff]  ;;  %v451_v49 = vadd.f32 %v323_v43, %v194_v40  ;;  %v176_v9 = vld [vmem:[#allocation7 + $0x268] sm:$0xff] }
  0x58   :  { %856 = vmatpush.bf16.msra.mxu2 %v775_v36  ;;  %v209_v50 = vld [vmem:[#allocation7 + $0x370] sm:$0xff]  ;;  %v210_v51 = vld [vmem:[#allocation7 + $0x378] sm:$0xff]  ;;  %875 = vmatpush.bf16.msrb.mxu0 %v798_v58  ;;  %v304_v10 = vld [vmem:[#allocation7 + $0x660] sm:$0xff] }
  0x59   :  { %v783_v47 = vpack.c.bf16 %v662_v37, %v661_v31  ;;  %v338_v52 = vld [vmem:[#allocation7 + $0x770] sm:$0xff]  ;;  %v707_v53 = vadd.f32 %v579_v45, %v450_v44  ;;  %v339_v54 = vld [vmem:[#allocation7 + $0x778] sm:$0xff]  ;;  %v708_v59 = vadd.f32 %v580_v46, %v451_v49  ;;  %v305_v12 = vld [vmem:[#allocation7 + $0x668] sm:$0xff]  ;;  %v432_v13 = vadd.f32 %v304_v10, %v175_v8 }
  0x5a   :  { %v466_v55 = vadd.f32 %v338_v52, %v209_v50  ;;  %v595_v56 = vld [vmem:[#allocation7 + $0xb70] sm:$0xff]  ;;  %v596_v57 = vld [vmem:[#allocation7 + $0xb78] sm:$0xff]  ;;  %v467_v60 = vadd.f32 %v339_v54, %v210_v51  ;;  %v561_v14 = vld [vmem:[#allocation7 + $0xa60] sm:$0xff]  ;;  %v433_v18 = vadd.f32 %v305_v12, %v176_v9 }
  0x5b   :  { %869 = vmatpush.bf16.msra.mxu3 %v783_v47  ;;  %v225_v61 = vld [vmem:[#allocation7 + $0x3f0] sm:$0xff]  ;;  %v226_v62 = vld [vmem:[#allocation7 + $0x3f8] sm:$0xff]  ;;  %v806_v5 = vpack.c.bf16 %v708_v59, %v707_v53  ;;  %v562_v15 = vld [vmem:[#allocation7 + $0xa68] sm:$0xff]  ;;  %v689_v22 = vadd.f32 %v561_v14, %v432_v13 }
  0x5c   :  { %v354_v63 = vld [vmem:[#allocation7 + $0x7f0] sm:$0xff]  ;;  %v723_v0 = vadd.f32 %v595_v56, %v466_v55  ;;  %v355_v1 = vld [vmem:[#allocation7 + $0x7f8] sm:$0xff]  ;;  %v724_v6 = vadd.f32 %v596_v57, %v467_v60  ;;  %v191_v19 = vld [vmem:[#allocation7 + $0x2e0] sm:$0xff]  ;;  %v690_v28 = vadd.f32 %v562_v15, %v433_v18 }
  0x5d   :  { %v482_v2 = vadd.f32 %v354_v63, %v225_v61  ;;  %v611_v3 = vld [vmem:[#allocation7 + $0xbf0] sm:$0xff]  ;;  %v612_v4 = vld [vmem:[#allocation7 + $0xbf8] sm:$0xff]  ;;  %v483_v7 = vadd.f32 %v355_v1, %v226_v62  ;;  %888 = vmatpush.bf16.msrb.mxu1 %v806_v5  ;;  %v192_v20 = vld [vmem:[#allocation7 + $0x2e8] sm:$0xff] }
  0x5e   :  { %v814_v16 = vpack.c.bf16 %v724_v6, %v723_v0  ;;  %v320_v21 = vld [vmem:[#allocation7 + $0x6e0] sm:$0xff]  ;;  %v321_v23 = vld [vmem:[#allocation7 + $0x6e8] sm:$0xff]  ;;  %v797_v38 = vpack.c.bf16 %v690_v28, %v689_v22  ;;  %v77_v52 = vld [vmem:[#allocation2 + $0x10] sm:$0xff] }
  0x5f   :  { %v739_v11 = vadd.f32 %v611_v3, %v482_v2  ;;  %v740_v17 = vadd.f32 %v612_v4, %v483_v7  ;;  %v448_v24 = vadd.f32 %v320_v21, %v191_v19  ;;  %v577_v25 = vld [vmem:[#allocation7 + $0xae0] sm:$0xff]  ;;  %v578_v26 = vld [vmem:[#allocation7 + $0xae8] sm:$0xff]  ;;  %v449_v29 = vadd.f32 %v321_v23, %v192_v20  ;;  %v85_v53 = vld [vmem:[#allocation5 + $0x10] sm:$0xff] }
  0x60   :  { %901 = vmatpush.bf16.msrb.mxu2 %v814_v16  ;;  %v207_v30 = vld [vmem:[#allocation7 + $0x360] sm:$0xff]  ;;  %v208_v31 = vld [vmem:[#allocation7 + $0x368] sm:$0xff]  ;;  %876 = vmatpush.bf16.msrb.mxu0 %v797_v38  ;;  %v173_v54 = vld [vmem:[#allocation7 + $0x250] sm:$0xff]  ;;  %v93_v56 = vadd.f32 %v85_v53, %v77_v52 }
  0x61   :  { %v822_v27 = vpack.c.bf16 %v740_v17, %v739_v11  ;;  %v336_v32 = vld [vmem:[#allocation7 + $0x760] sm:$0xff]  ;;  %v705_v33 = vadd.f32 %v577_v25, %v448_v24  ;;  %v337_v34 = vld [vmem:[#allocation7 + $0x768] sm:$0xff]  ;;  %v706_v39 = vadd.f32 %v578_v26, %v449_v29  ;;  %v174_v57 = vld [vmem:[#allocation7 + $0x258] sm:$0xff] }
  0x62   :  { %v464_v35 = vadd.f32 %v336_v32, %v207_v30  ;;  %v593_v36 = vld [vmem:[#allocation7 + $0xb60] sm:$0xff]  ;;  %v594_v37 = vld [vmem:[#allocation7 + $0xb68] sm:$0xff]  ;;  %v465_v40 = vadd.f32 %v337_v34, %v208_v31  ;;  %v302_v58 = vld [vmem:[#allocation7 + $0x650] sm:$0xff]  ;;  %v753_v3 = vpack.c.bf16 %v93_v56, %v93_v56 }
  0x63   :  { %914 = vmatpush.bf16.msrb.mxu3 %v822_v27  ;;  %v223_v41 = vld [vmem:[#allocation7 + $0x3e0] sm:$0xff]  ;;  %v224_v42 = vld [vmem:[#allocation7 + $0x3e8] sm:$0xff]  ;;  %v805_v49 = vpack.c.bf16 %v706_v39, %v705_v33  ;;  %v303_v59 = vld [vmem:[#allocation7 + $0x658] sm:$0xff]  ;;  %v430_v62 = vadd.f32 %v302_v58, %v173_v54 }
  0x64   :  { %v352_v43 = vld [vmem:[#allocation7 + $0x7e0] sm:$0xff]  ;;  %v721_v44 = vadd.f32 %v593_v36, %v464_v35  ;;  %v353_v45 = vld [vmem:[#allocation7 + $0x7e8] sm:$0xff]  ;;  %v722_v50 = vadd.f32 %v594_v37, %v465_v40  ;;  %v431_v63 = vadd.f32 %v303_v59, %v174_v57  ;;  %v559_v0 = vld [vmem:[#allocation7 + $0xa50] sm:$0xff]  ;;  %857 = vmatmul.bf16.vlgmr.msra.gmra.mxu2 %v753_v3 }
  0x65   :  { %v480_v46 = vadd.f32 %v352_v43, %v223_v41  ;;  %v609_v47 = vld [vmem:[#allocation7 + $0xbe0] sm:$0xff]  ;;  %v610_v48 = vld [vmem:[#allocation7 + $0xbe8] sm:$0xff]  ;;  %v481_v51 = vadd.f32 %v353_v45, %v224_v42  ;;  %889 = vmatpush.bf16.msrb.mxu1 %v805_v49  ;;  %v560_v1 = vld [vmem:[#allocation7 + $0xa58] sm:$0xff]  ;;  %v687_v8 = vadd.f32 %v559_v0, %v430_v62 }
  0x66   :  { %v813_v60 = vpack.c.bf16 %v722_v50, %v721_v44  ;;  %v189_v2 = vld [vmem:[#allocation7 + $0x2d0] sm:$0xff]  ;;  %v190_v4 = vld [vmem:[#allocation7 + $0x2d8] sm:$0xff]  ;;  %v688_v9 = vadd.f32 %v560_v1, %v431_v63  ;;  %v75_v35 = vld [vmem:[#allocation2] sm:$0xff] }
  0x67   :  { %v737_v55 = vadd.f32 %v609_v47, %v480_v46  ;;  %v738_v61 = vadd.f32 %v610_v48, %v481_v51  ;;  %v318_v5 = vld [vmem:[#allocation7 + $0x6d0] sm:$0xff]  ;;  %v319_v6 = vld [vmem:[#allocation7 + $0x6d8] sm:$0xff]  ;;  %v83_v37 = vld [vmem:[#allocation5] sm:$0xff] }
  0x68   :  { %902 = vmatpush.bf16.msrb.mxu2 %v813_v60  ;;  %v446_v10 = vadd.f32 %v318_v5, %v189_v2  ;;  %v575_v11 = vld [vmem:[#allocation7 + $0xad0] sm:$0xff]  ;;  %v576_v12 = vld [vmem:[#allocation7 + $0xad8] sm:$0xff]  ;;  %v447_v14 = vadd.f32 %v319_v6, %v190_v4  ;;  %v796_v18 = vpack.c.bf16 %v688_v9, %v687_v8  ;;  %v91_v43 = vadd.f32 %v83_v37, %v75_v35  ;;  %v76_v44 = vld [vmem:[#allocation2 + $0x8] sm:$0xff] }
  0x69   :  { %v821_v7 = vpack.c.bf16 %v738_v61, %v737_v55  ;;  %v205_v13 = vld [vmem:[#allocation7 + $0x350] sm:$0xff]  ;;  %v206_v15 = vld [vmem:[#allocation7 + $0x358] sm:$0xff]  ;;  %v84_v45 = vld [vmem:[#allocation5 + $0x8] sm:$0xff] }
  0x6a   :  { %v334_v16 = vld [vmem:[#allocation7 + $0x750] sm:$0xff]  ;;  %v335_v17 = vld [vmem:[#allocation7 + $0x758] sm:$0xff]  ;;  %v703_v19 = vadd.f32 %v575_v11, %v446_v10  ;;  %v704_v25 = vadd.f32 %v576_v12, %v447_v14  ;;  %877 = vmatpush.bf16.msrb.mxu0 %v796_v18  ;;  %v171_v46 = vld [vmem:[#allocation7 + $0x240] sm:$0xff]  ;;  %v92_v48 = vadd.f32 %v84_v45, %v76_v44  ;;  %v751_v53 = vpack.c.bf16 %v91_v43, %v91_v43 }
  0x6b   :  { %915 = vmatpush.bf16.msrb.mxu3 %v821_v7  ;;  %v462_v20 = vadd.f32 %v334_v16, %v205_v13  ;;  %v463_v21 = vadd.f32 %v335_v17, %v206_v15  ;;  %v591_v22 = vld [vmem:[#allocation7 + $0xb50] sm:$0xff]  ;;  %v592_v23 = vld [vmem:[#allocation7 + $0xb58] sm:$0xff]  ;;  %v172_v49 = vld [vmem:[#allocation7 + $0x248] sm:$0xff] }
  0x6c   :  { %v221_v24 = vld [vmem:[#allocation7 + $0x3d0] sm:$0xff]  ;;  %v222_v26 = vld [vmem:[#allocation7 + $0x3d8] sm:$0xff]  ;;  %v804_v36 = vpack.c.bf16 %v704_v25, %v703_v19  ;;  %v300_v50 = vld [vmem:[#allocation7 + $0x640] sm:$0xff]  ;;  %v752_v60 = vpack.c.bf16 %v92_v48, %v92_v48  ;;  %831 = vmatmul.bf16.vlgmr.msra.gmra.mxu0 %v751_v53 }
  0x6d   :  { %v350_v27 = vld [vmem:[#allocation7 + $0x7d0] sm:$0xff]  ;;  %v351_v28 = vld [vmem:[#allocation7 + $0x7d8] sm:$0xff]  ;;  %v719_v29 = vadd.f32 %v591_v22, %v462_v20  ;;  %v720_v30 = vadd.f32 %v592_v23, %v463_v21  ;;  %v301_v51 = vld [vmem:[#allocation7 + $0x648] sm:$0xff]  ;;  %v428_v54 = vadd.f32 %v300_v50, %v171_v46 }
  0x6e   :  { %v478_v31 = vadd.f32 %v350_v27, %v221_v24  ;;  %v479_v32 = vadd.f32 %v351_v28, %v222_v26  ;;  %v607_v33 = vld [vmem:[#allocation7 + $0xbd0] sm:$0xff]  ;;  %v608_v34 = vld [vmem:[#allocation7 + $0xbd8] sm:$0xff]  ;;  %890 = vmatpush.bf16.msrb.mxu1 %v804_v36  ;;  %v429_v55 = vadd.f32 %v301_v51, %v172_v49  ;;  %v557_v56 = vld [vmem:[#allocation7 + $0xa40] sm:$0xff] }
  0x6f   :  { %v78_v38 = vld [vmem:[#allocation2 + $0x18] sm:$0xff]  ;;  %v812_v40 = vpack.c.bf16 %v720_v30, %v719_v29  ;;  %v558_v57 = vld [vmem:[#allocation7 + $0xa48] sm:$0xff]  ;;  %v187_v58 = vld [vmem:[#allocation7 + $0x2c0] sm:$0xff]  ;;  %v685_v0 = vadd.f32 %v557_v56, %v428_v54  ;;  %844 = vmatmul.bf16.vlgmr.msra.gmra.mxu1 %v752_v60 }
  0x70   :  { %v86_v39 = vld [vmem:[#allocation5 + $0x18] sm:$0xff]  ;;  %v735_v41 = vadd.f32 %v607_v33, %v478_v31  ;;  %v736_v42 = vadd.f32 %v608_v34, %v479_v32  ;;  %v188_v61 = vld [vmem:[#allocation7 + $0x2c8] sm:$0xff]  ;;  %v316_v62 = vld [vmem:[#allocation7 + $0x6c0] sm:$0xff]  ;;  %v686_v1 = vadd.f32 %v558_v57, %v429_v55 }
  0x71   :  { %v94_v47 = vadd.f32 %v86_v39, %v78_v38  ;;  %903 = vmatpush.bf16.msrb.mxu2 %v812_v40  ;;  %v317_v63 = vld [vmem:[#allocation7 + $0x6c8] sm:$0xff]  ;;  %v444_v2 = vadd.f32 %v316_v62, %v187_v58  ;;  %v573_v3 = vld [vmem:[#allocation7 + $0xac0] sm:$0xff]  ;;  %v169_v27 = vld [vmem:[#allocation7 + $0x230] sm:$0xff] }
  0x72   :  { %v820_v52 = vpack.c.bf16 %v736_v42, %v735_v41  ;;  %v574_v4 = vld [vmem:[#allocation7 + $0xac8] sm:$0xff]  ;;  %v203_v5 = vld [vmem:[#allocation7 + $0x340] sm:$0xff]  ;;  %v445_v6 = vadd.f32 %v317_v63, %v188_v61  ;;  %v795_v10 = vpack.c.bf16 %v686_v1, %v685_v0  ;;  %v170_v29 = vld [vmem:[#allocation7 + $0x238] sm:$0xff] }
  0x73   :  { %v754_v59 = vpack.c.bf16 %v94_v47, %v94_v47  ;;  %v204_v7 = vld [vmem:[#allocation7 + $0x348] sm:$0xff]  ;;  %v332_v8 = vld [vmem:[#allocation7 + $0x740] sm:$0xff]  ;;  %v701_v11 = vadd.f32 %v573_v3, %v444_v2  ;;  %v298_v30 = vld [vmem:[#allocation7 + $0x630] sm:$0xff] }
  0x74   :  { %916 = vmatpush.bf16.msrb.mxu3 %v820_v52  ;;  %v333_v9 = vld [vmem:[#allocation7 + $0x748] sm:$0xff]  ;;  %v460_v12 = vadd.f32 %v332_v8, %v203_v5  ;;  %v589_v14 = vld [vmem:[#allocation7 + $0xb40] sm:$0xff]  ;;  %v702_v17 = vadd.f32 %v574_v4, %v445_v6  ;;  %878 = vmatpush.bf16.msrb.mxu0 %v795_v10  ;;  %v299_v31 = vld [vmem:[#allocation7 + $0x638] sm:$0xff]  ;;  %v426_v35 = vadd.f32 %v298_v30, %v169_v27 }
  0x75   :  { %870 = vmatmul.bf16.vlgmr.msra.gmra.mxu3 %v754_v59  ;;  %v461_v13 = vadd.f32 %v333_v9, %v204_v7  ;;  %v590_v15 = vld [vmem:[#allocation7 + $0xb48] sm:$0xff]  ;;  %v219_v16 = vld [vmem:[#allocation7 + $0x3c0] sm:$0xff]  ;;  %v555_v36 = vld [vmem:[#allocation7 + $0xa30] sm:$0xff]  ;;  %v427_v39 = vadd.f32 %v299_v31, %v170_v29 }
  0x76   :  { %v220_v18 = vld [vmem:[#allocation7 + $0x3c8] sm:$0xff]  ;;  %v348_v19 = vld [vmem:[#allocation7 + $0x7c0] sm:$0xff]  ;;  %v717_v21 = vadd.f32 %v589_v14, %v460_v12  ;;  %v803_v28 = vpack.c.bf16 %v702_v17, %v701_v11  ;;  %v556_v37 = vld [vmem:[#allocation7 + $0xa38] sm:$0xff]  ;;  %v683_v44 = vadd.f32 %v555_v36, %v426_v35 }
  0x77   :  { %v349_v20 = vld [vmem:[#allocation7 + $0x7c8] sm:$0xff]  ;;  %v718_v22 = vadd.f32 %v590_v15, %v461_v13  ;;  %v476_v23 = vadd.f32 %v348_v19, %v219_v16  ;;  %v605_v25 = vld [vmem:[#allocation7 + $0xbc0] sm:$0xff]  ;;  %v185_v38 = vld [vmem:[#allocation7 + $0x2b0] sm:$0xff]  ;;  %v684_v50 = vadd.f32 %v556_v37, %v427_v39 }
  0x78   :  { %v477_v24 = vadd.f32 %v349_v20, %v220_v18  ;;  %v606_v26 = vld [vmem:[#allocation7 + $0xbc8] sm:$0xff]  ;;  %891 = vmatpush.bf16.msrb.mxu1 %v803_v28  ;;  %v186_v40 = vld [vmem:[#allocation7 + $0x2b8] sm:$0xff]  ;;  %v314_v41 = vld [vmem:[#allocation7 + $0x6b0] sm:$0xff] }
  0x79   :  { %v811_v32 = vpack.c.bf16 %v718_v22, %v717_v21  ;;  %v733_v33 = vadd.f32 %v605_v25, %v476_v23  ;;  %v315_v42 = vld [vmem:[#allocation7 + $0x6b8] sm:$0xff]  ;;  %v442_v45 = vadd.f32 %v314_v41, %v185_v38  ;;  %v571_v47 = vld [vmem:[#allocation7 + $0xab0] sm:$0xff]  ;;  %v794_v61 = vpack.c.bf16 %v684_v50, %v683_v44  ;;  %v167_v7 = vld [vmem:[#allocation7 + $0x220] sm:$0xff] }
  0x7a   :  { %v734_v34 = vadd.f32 %v606_v26, %v477_v24  ;;  %v443_v46 = vadd.f32 %v315_v42, %v186_v40  ;;  %v572_v48 = vld [vmem:[#allocation7 + $0xab8] sm:$0xff]  ;;  %v201_v49 = vld [vmem:[#allocation7 + $0x330] sm:$0xff]  ;;  %v168_v9 = vld [vmem:[#allocation7 + $0x228] sm:$0xff] }
  0x7b   :  { %904 = vmatpush.bf16.msrb.mxu2 %v811_v32  ;;  %v202_v51 = vld [vmem:[#allocation7 + $0x338] sm:$0xff]  ;;  %v330_v52 = vld [vmem:[#allocation7 + $0x730] sm:$0xff]  ;;  %v699_v54 = vadd.f32 %v571_v47, %v442_v45  ;;  %879 = vmatpush.bf16.msrb.mxu0 %v794_v61  ;;  %v296_v10 = vld [vmem:[#allocation7 + $0x620] sm:$0xff] }
  0x7c   :  { %v819_v43 = vpack.c.bf16 %v734_v34, %v733_v33  ;;  %v331_v53 = vld [vmem:[#allocation7 + $0x738] sm:$0xff]  ;;  %v700_v55 = vadd.f32 %v572_v48, %v443_v46  ;;  %v458_v56 = vadd.f32 %v330_v52, %v201_v49  ;;  %v587_v58 = vld [vmem:[#allocation7 + $0xb30] sm:$0xff]  ;;  %v297_v11 = vld [vmem:[#allocation7 + $0x628] sm:$0xff]  ;;  %v424_v14 = vadd.f32 %v296_v10, %v167_v7 }
  0x7d   :  { %v459_v57 = vadd.f32 %v331_v53, %v202_v51  ;;  %v588_v59 = vld [vmem:[#allocation7 + $0xb38] sm:$0xff]  ;;  %v217_v60 = vld [vmem:[#allocation7 + $0x3b0] sm:$0xff]  ;;  %v425_v15 = vadd.f32 %v297_v11, %v168_v9  ;;  %v553_v16 = vld [vmem:[#allocation7 + $0xa20] sm:$0xff] }
  0x7e   :  { %917 = vmatpush.bf16.msrb.mxu3 %v819_v43  ;;  %v218_v62 = vld [vmem:[#allocation7 + $0x3b8] sm:$0xff]  ;;  %v346_v63 = vld [vmem:[#allocation7 + $0x7b0] sm:$0xff]  ;;  %v802_v1 = vpack.c.bf16 %v700_v55, %v699_v54  ;;  %v715_v2 = vadd.f32 %v587_v58, %v458_v56  ;;  %v554_v17 = vld [vmem:[#allocation7 + $0xa28] sm:$0xff]  ;;  %v681_v23 = vadd.f32 %v553_v16, %v424_v14 }
  0x7f   :  { %v347_v0 = vld [vmem:[#allocation7 + $0x7b8] sm:$0xff]  ;;  %v716_v3 = vadd.f32 %v588_v59, %v459_v57  ;;  %v474_v4 = vadd.f32 %v346_v63, %v217_v60  ;;  %v603_v5 = vld [vmem:[#allocation7 + $0xbb0] sm:$0xff]  ;;  %v183_v18 = vld [vmem:[#allocation7 + $0x2a0] sm:$0xff]  ;;  %v682_v24 = vadd.f32 %v554_v17, %v425_v15 }
  0x80   :  { %v604_v6 = vld [vmem:[#allocation7 + $0xbb8] sm:$0xff]  ;;  %v475_v8 = vadd.f32 %v347_v0, %v218_v62  ;;  %892 = vmatpush.bf16.msrb.mxu1 %v802_v1  ;;  %v184_v20 = vld [vmem:[#allocation7 + $0x2a8] sm:$0xff]  ;;  %v312_v21 = vld [vmem:[#allocation7 + $0x6a0] sm:$0xff] }
  0x81   :  { %v810_v12 = vpack.c.bf16 %v716_v3, %v715_v2  ;;  %v731_v13 = vadd.f32 %v603_v5, %v474_v4  ;;  %v313_v22 = vld [vmem:[#allocation7 + $0x6a8] sm:$0xff]  ;;  %v440_v25 = vadd.f32 %v312_v21, %v183_v18  ;;  %v569_v27 = vld [vmem:[#allocation7 + $0xaa0] sm:$0xff]  ;;  %v793_v34 = vpack.c.bf16 %v682_v24, %v681_v23  ;;  %v165_v51 = vld [vmem:[#allocation7 + $0x210] sm:$0xff] }
  0x82   :  { %v732_v19 = vadd.f32 %v604_v6, %v475_v8  ;;  %v441_v26 = vadd.f32 %v313_v22, %v184_v20  ;;  %v570_v28 = vld [vmem:[#allocation7 + $0xaa8] sm:$0xff]  ;;  %v199_v29 = vld [vmem:[#allocation7 + $0x320] sm:$0xff]  ;;  %v166_v53 = vld [vmem:[#allocation7 + $0x218] sm:$0xff] }
  0x83   :  { %905 = vmatpush.bf16.msrb.mxu2 %v810_v12  ;;  %v200_v31 = vld [vmem:[#allocation7 + $0x328] sm:$0xff]  ;;  %v328_v32 = vld [vmem:[#allocation7 + $0x720] sm:$0xff]  ;;  %v697_v35 = vadd.f32 %v569_v27, %v440_v25  ;;  %880 = vmatpush.bf16.msrb.mxu0 %v793_v34  ;;  %v294_v54 = vld [vmem:[#allocation7 + $0x610] sm:$0xff] }
  0x84   :  { %v818_v30 = vpack.c.bf16 %v732_v19, %v731_v13  ;;  %v329_v33 = vld [vmem:[#allocation7 + $0x728] sm:$0xff]  ;;  %v698_v36 = vadd.f32 %v570_v28, %v441_v26  ;;  %v456_v37 = vadd.f32 %v328_v32, %v199_v29  ;;  %v585_v38 = vld [vmem:[#allocation7 + $0xb20] sm:$0xff]  ;;  %v295_v55 = vld [vmem:[#allocation7 + $0x618] sm:$0xff]  ;;  %v422_v58 = vadd.f32 %v294_v54, %v165_v51 }
  0x85   :  { %v586_v39 = vld [vmem:[#allocation7 + $0xb28] sm:$0xff]  ;;  %v215_v40 = vld [vmem:[#allocation7 + $0x3a0] sm:$0xff]  ;;  %v457_v41 = vadd.f32 %v329_v33, %v200_v31  ;;  %v423_v59 = vadd.f32 %v295_v55, %v166_v53  ;;  %v551_v60 = vld [vmem:[#allocation7 + $0xa10] sm:$0xff] }
  0x86   :  { %918 = vmatpush.bf16.msrb.mxu3 %v818_v30  ;;  %v216_v42 = vld [vmem:[#allocation7 + $0x3a8] sm:$0xff]  ;;  %v344_v43 = vld [vmem:[#allocation7 + $0x7a0] sm:$0xff]  ;;  %v801_v45 = vpack.c.bf16 %v698_v36, %v697_v35  ;;  %v713_v46 = vadd.f32 %v585_v38, %v456_v37  ;;  %v552_v61 = vld [vmem:[#allocation7 + $0xa18] sm:$0xff]  ;;  %v679_v4 = vadd.f32 %v551_v60, %v422_v58 }
  0x87   :  { %v345_v44 = vld [vmem:[#allocation7 + $0x7a8] sm:$0xff]  ;;  %v472_v47 = vadd.f32 %v344_v43, %v215_v40  ;;  %v601_v49 = vld [vmem:[#allocation7 + $0xba0] sm:$0xff]  ;;  %v714_v52 = vadd.f32 %v586_v39, %v457_v41  ;;  %v181_v62 = vld [vmem:[#allocation7 + $0x290] sm:$0xff]  ;;  %v680_v5 = vadd.f32 %v552_v61, %v423_v59 }
  0x88   :  { %v473_v48 = vadd.f32 %v345_v44, %v216_v42  ;;  %v602_v50 = vld [vmem:[#allocation7 + $0xba8] sm:$0xff]  ;;  %893 = vmatpush.bf16.msrb.mxu1 %v801_v45  ;;  %v182_v0 = vld [vmem:[#allocation7 + $0x298] sm:$0xff]  ;;  %v310_v1 = vld [vmem:[#allocation7 + $0x690] sm:$0xff] }
  0x89   :  { %v729_v56 = vadd.f32 %v601_v49, %v472_v47  ;;  %v809_v63 = vpack.c.bf16 %v714_v52, %v713_v46  ;;  %v311_v2 = vld [vmem:[#allocation7 + $0x698] sm:$0xff]  ;;  %v438_v6 = vadd.f32 %v310_v1, %v181_v62  ;;  %v567_v7 = vld [vmem:[#allocation7 + $0xa90] sm:$0xff]  ;;  %v792_v14 = vpack.c.bf16 %v680_v5, %v679_v4  ;;  %v163_v31 = vld [vmem:[#allocation7 + $0x200] sm:$0xff] }
  0x8a   :  { %v730_v57 = vadd.f32 %v602_v50, %v473_v48  ;;  %v568_v8 = vld [vmem:[#allocation7 + $0xa98] sm:$0xff]  ;;  %v197_v9 = vld [vmem:[#allocation7 + $0x310] sm:$0xff]  ;;  %v439_v10 = vadd.f32 %v311_v2, %v182_v0  ;;  %v164_v33 = vld [vmem:[#allocation7 + $0x208] sm:$0xff] }
  0x8b   :  { %906 = vmatpush.bf16.msrb.mxu2 %v809_v63  ;;  %v198_v11 = vld [vmem:[#allocation7 + $0x318] sm:$0xff]  ;;  %v326_v12 = vld [vmem:[#allocation7 + $0x710] sm:$0xff]  ;;  %v695_v15 = vadd.f32 %v567_v7, %v438_v6  ;;  %881 = vmatpush.bf16.msrb.mxu0 %v792_v14  ;;  %v292_v34 = vld [vmem:[#allocation7 + $0x600] sm:$0xff] }
  0x8c   :  { %v817_v3 = vpack.c.bf16 %v730_v57, %v729_v56  ;;  %v327_v13 = vld [vmem:[#allocation7 + $0x718] sm:$0xff]  ;;  %v454_v16 = vadd.f32 %v326_v12, %v197_v9  ;;  %v583_v18 = vld [vmem:[#allocation7 + $0xb10] sm:$0xff]  ;;  %v696_v21 = vadd.f32 %v568_v8, %v439_v10  ;;  %v293_v35 = vld [vmem:[#allocation7 + $0x608] sm:$0xff]  ;;  %v420_v39 = vadd.f32 %v292_v34, %v163_v31 }
  0x8d   :  { %v455_v17 = vadd.f32 %v327_v13, %v198_v11  ;;  %v584_v19 = vld [vmem:[#allocation7 + $0xb18] sm:$0xff]  ;;  %v213_v20 = vld [vmem:[#allocation7 + $0x390] sm:$0xff]  ;;  %v549_v40 = vld [vmem:[#allocation7 + $0xa00] sm:$0xff]  ;;  %v421_v43 = vadd.f32 %v293_v35, %v164_v33 }
  0x8e   :  { %919 = vmatpush.bf16.msrb.mxu3 %v817_v3  ;;  %v214_v22 = vld [vmem:[#allocation7 + $0x398] sm:$0xff]  ;;  %v342_v23 = vld [vmem:[#allocation7 + $0x790] sm:$0xff]  ;;  %v711_v25 = vadd.f32 %v583_v18, %v454_v16  ;;  %v800_v32 = vpack.c.bf16 %v696_v21, %v695_v15  ;;  %v550_v41 = vld [vmem:[#allocation7 + $0xa08] sm:$0xff]  ;;  %v677_v48 = vadd.f32 %v549_v40, %v420_v39 }
  0x8f   :  { %v343_v24 = vld [vmem:[#allocation7 + $0x798] sm:$0xff]  ;;  %v712_v26 = vadd.f32 %v584_v19, %v455_v17  ;;  %v470_v27 = vadd.f32 %v342_v23, %v213_v20  ;;  %v599_v29 = vld [vmem:[#allocation7 + $0xb90] sm:$0xff]  ;;  %v179_v42 = vld [vmem:[#allocation7 + $0x280] sm:$0xff]  ;;  %v678_v54 = vadd.f32 %v550_v41, %v421_v43 }
  0x90   :  { %v471_v28 = vadd.f32 %v343_v24, %v214_v22  ;;  %v600_v30 = vld [vmem:[#allocation7 + $0xb98] sm:$0xff]  ;;  %894 = vmatpush.bf16.msrb.mxu1 %v800_v32  ;;  %v180_v44 = vld [vmem:[#allocation7 + $0x288] sm:$0xff]  ;;  %v308_v45 = vld [vmem:[#allocation7 + $0x680] sm:$0xff] }
  0x91   :  { %v808_v36 = vpack.c.bf16 %v712_v26, %v711_v25  ;;  %v727_v37 = vadd.f32 %v599_v29, %v470_v27  ;;  %v309_v46 = vld [vmem:[#allocation7 + $0x688] sm:$0xff]  ;;  %v436_v49 = vadd.f32 %v308_v45, %v179_v42  ;;  %v565_v51 = vld [vmem:[#allocation7 + $0xa80] sm:$0xff]  ;;  %v791_v1 = vpack.c.bf16 %v678_v54, %v677_v48  ;;  %v81_v20 = vld [vmem:[#allocation2 + $0x30] sm:$0xff] }
  0x92   :  { %v728_v38 = vadd.f32 %v600_v30, %v471_v28  ;;  %v437_v50 = vadd.f32 %v309_v46, %v180_v44  ;;  %v566_v52 = vld [vmem:[#allocation7 + $0xa88] sm:$0xff]  ;;  %v195_v53 = vld [vmem:[#allocation7 + $0x300] sm:$0xff]  ;;  %v89_v21 = vld [vmem:[#allocation5 + $0x30] sm:$0xff] }
  0x93   :  { %907 = vmatpush.bf16.msrb.mxu2 %v808_v36  ;;  %v196_v55 = vld [vmem:[#allocation7 + $0x308] sm:$0xff]  ;;  %v324_v56 = vld [vmem:[#allocation7 + $0x700] sm:$0xff]  ;;  %v693_v58 = vadd.f32 %v565_v51, %v436_v49  ;;  %882 = vmatpush.bf16.msrb.mxu0 %v791_v1  ;;  %v82_v22 = vld [vmem:[#allocation2 + $0x38] sm:$0xff]  ;;  %v97_v24 = vadd.f32 %v89_v21, %v81_v20 }
  0x94   :  { %v816_v47 = vpack.c.bf16 %v728_v38, %v727_v37  ;;  %v325_v57 = vld [vmem:[#allocation7 + $0x708] sm:$0xff]  ;;  %v694_v59 = vadd.f32 %v566_v52, %v437_v50  ;;  %v452_v60 = vadd.f32 %v324_v56, %v195_v53  ;;  %v581_v62 = vld [vmem:[#allocation7 + $0xb00] sm:$0xff]  ;;  %v90_v25 = vld [vmem:[#allocation5 + $0x38] sm:$0xff] }
  0x95   :  { %v453_v61 = vadd.f32 %v325_v57, %v196_v55  ;;  %v582_v63 = vld [vmem:[#allocation7 + $0xb08] sm:$0xff]  ;;  %v211_v0 = vld [vmem:[#allocation7 + $0x380] sm:$0xff]  ;;  %v98_v28 = vadd.f32 %v90_v25, %v82_v22  ;;  %v757_v30 = vpack.c.bf16 %v97_v24, %v97_v24 }
  0x96   :  { %920 = vmatpush.bf16.msrb.mxu3 %v816_v47  ;;  %v212_v2 = vld [vmem:[#allocation7 + $0x388] sm:$0xff]  ;;  %v340_v3 = vld [vmem:[#allocation7 + $0x780] sm:$0xff]  ;;  %v799_v5 = vpack.c.bf16 %v694_v59, %v693_v58  ;;  %v709_v6 = vadd.f32 %v581_v62, %v452_v60 }
  0x97   :  { %v341_v4 = vld [vmem:[#allocation7 + $0x788] sm:$0xff]  ;;  %v710_v7 = vadd.f32 %v582_v63, %v453_v61  ;;  %v468_v8 = vadd.f32 %v340_v3, %v211_v0  ;;  %v597_v9 = vld [vmem:[#allocation7 + $0xb80] sm:$0xff]  ;;  %v758_v31 = vpack.c.bf16 %v98_v28, %v98_v28 }
  0x98   :  { %v598_v10 = vld [vmem:[#allocation7 + $0xb88] sm:$0xff]  ;;  %v79_v11 = vld [vmem:[#allocation2 + $0x20] sm:$0xff]  ;;  %v469_v12 = vadd.f32 %v341_v4, %v212_v2  ;;  %895 = vmatpush.bf16.msrb.mxu1 %v799_v5 }
  0x99   :  { %v87_v13 = vld [vmem:[#allocation5 + $0x20] sm:$0xff]  ;;  %v80_v14 = vld [vmem:[#allocation2 + $0x28] sm:$0xff]  ;;  %v807_v16 = vpack.c.bf16 %v710_v7, %v709_v6  ;;  %v725_v17 = vadd.f32 %v597_v9, %v468_v8 }
  0x9a   :  { %v88_v15 = vld [vmem:[#allocation5 + $0x28] sm:$0xff]  ;;  %v95_v18 = vadd.f32 %v87_v13, %v79_v11  ;;  %v726_v23 = vadd.f32 %v598_v10, %v469_v12  ;;  %v741_v40 = vld [vmem:[#allocation8] sm:$0x7] }
  0x9b   :  { %v96_v19 = vadd.f32 %v88_v15, %v80_v14  ;;  %908 = vmatpush.bf16.msrb.mxu2 %v807_v16  ;;  %v743_v41 = vsel %vm742_vm0, %v741_v40, 0.0 }
  0x9c   :  { %v755_v26 = vpack.c.bf16 %v95_v18, %v95_v18  ;;  %v815_v29 = vpack.c.bf16 %v726_v23, %v725_v17  ;;  %v744_v42 = vrot.slane %v743_v41, 4 }
  0x9d   :  { %v756_v27 = vpack.c.bf16 %v96_v19, %v96_v19 }
  0x9e   :  { %883 = vmatmul.bf16.vlgmr.msrb.gmra.mxu0 %v755_v26  ;;  %921 = vmatpush.bf16.msrb.mxu3 %v815_v29  ;;  %v745_v43 = vadd.f32 %v744_v42, %v743_v41 }
  0x9f   :  { %896 = vmatmul.bf16.vlgmr.msrb.gmra.mxu1 %v756_v27  ;;  %909 = vmatmul.bf16.vlgmr.msrb.gmra.mxu2 %v757_v30 }
  0xa0   :  { %v746_v45 = vrot.slane %v745_v43, 2 }
  0xa1   :  { %922 = vmatmul.bf16.vlgmr.msrb.gmra.mxu3 %v758_v31 }
  0xa2   :  { %v747_v47 = vadd.f32 %v746_v45, %v745_v43 }
  0xa4   :  { %v748_v52 = vrot.slane %v747_v47, 1 }
  0xa6   :  { %v749_v55 = vadd.f32 %v748_v52, %v747_v47 }
  0xa8   :  { %v750_v60 = vmul.f32 0.33333334, %v749_v55 }
  0xe7   :  { %v858_v32 = vpop.f32.mrf.mxu2 }
  0xe9   :  { %v832_v33 = vpop.f32.mrf.mxu0 }
  0xec   :  { %v845_v34 = vpop.f32.mrf.mxu1 }
  0xed   :  { %v846_v44 = vadd.f32 %v845_v34, %v832_v33 }
  0xef   :  { %v860_v35 = vpop.f32.mrf.mxu2  ;;  %v859_v46 = vadd.f32 %v858_v32, %v846_v44 }
  0xf1   :  { %v834_v37 = vpop.f32.mrf.mxu0 }
  0xf4   :  { %v847_v38 = vpop.f32.mrf.mxu1 }
  0xf8   :  { %v871_v36 = vpop.f32.mrf.mxu3 }
  0xf9   :  { %v872_v48 = vadd.f32 %v871_v36, %v859_v46 }
 0x100   :  { %v873_v39 = vpop.f32.mrf.mxu3 }
 0x11b   :  { %v884_v49 = vpop.f32.mrf.mxu0 }
 0x11c   :  { %v897_v50 = vpop.f32.mrf.mxu1  ;;  %v885_v51 = vadd.f32 %v884_v49, %v872_v48 }
 0x11e   :  { %v898_v53 = vadd.f32 %v897_v50, %v885_v51 }
 0x122   :  { %v910_v54 = vpop.f32.mrf.mxu2 }
 0x123   :  { %v911_v56 = vadd.f32 %v910_v54, %v898_v53  ;;  %v886_v57 = vpop.f32.mrf.mxu0 }
 0x124   :  { %v899_v58 = vpop.f32.mrf.mxu1  ;;  %v923_v59 = vpop.f32.mrf.mxu3 }
 0x125   :  { %v924_v61 = vadd.f32 %v923_v59, %v911_v56 }
 0x127   :  { %v927_v62 = vmul.f32 0.16666667, %v924_v61 }
 0x129   :  { %v928_v63 = vadd.f32 %v927_v62, %v750_v60 }
 0x12a   :  { %v912_v0 = vpop.f32.mrf.mxu2 }
 0x12b   :  { %929 = vst [vmem:[#allocation10] sm:$0xff] %v928_v63 }
 0x12c   :  { %v925_v1 = vpop.f32.mrf.mxu3  ;;  %940 = dma.vmem_to_hbm [thread:$0]  %s936_s3, 128, %s938_s11, [#allocation4]  }
 0x12d   :  { %1082 = dma.done.wait [#allocation4], 128  }
 0x12e   :  { %1083 = vsyncadd [#allocation4], 4294967168 }
 0x12f   :  { %945 = vsyncpa [#allocation3], 1 }
 0x130   :  { %946 = vsyncpa [#allocation6], 1 }
 0x131   :  { %947 = vsyncpa [#allocation9], 1 }
 0x132   :  { %948 = vsyncpa [#allocation4], 1 }

</bundles_post_ra>
